<compile_context>
chip_gen: v6e
topology: v6e:2x2x1
jax: 0.10.0
libtpu: 0.0.40
codegen_flags: <defaults>
</compile_context>

<pallas_src>
import math
import jax
import jax.numpy as jnp
from jax.experimental import pallas as pl
from jax.experimental.pallas import tpu as pltpu

# Logical sizes (from the PyTorch module)
IN_F, HID_F, OUT_F = 3, 4, 1

LANES = 128
MAX_TILE_BLOCKS = 2048      # 2048*128 = 262144 rows/step: x 3 MiB + out 1 MiB,
                            # ~8 MiB double-buffered -> under v5e's 16 MiB default
SINGLE_STEP_BLOCKS = 16     # batches <= 2048 rows: one grid step, splitting not worth it


def _mlp_kernel(p_ref, x_ref, o_ref):
    # p_ref: (21,) f32 SMEM = [w1 row-major (12) | b1 (4) | w2 (4) | b2 (1)]
    #        w1[i, j] -> p[4*i + j], b1[j] -> p[12+j], w2[j] -> p[16+j], b2 -> p[20]
    # x_ref: (3, tbo, 128) VMEM  -- feature-major, lane-dense batch rows
    # o_ref: (tbo, 128)    VMEM  -- lane-dense predictions
    x0 = x_ref[0]
    x1 = x_ref[1]
    x2 = x_ref[2]
    # hidden unit 0: fold b2 into the accumulator init (saves zeros-init + final add)
    h0 = x0 * p_ref[0] + x1 * p_ref[4] + x2 * p_ref[8] + p_ref[12]
    acc = jnp.maximum(h0, 0.0) * p_ref[16] + p_ref[20]
    for j in range(1, HID_F):               # static unroll over hidden units (VPU FMAs)
        h = x0 * p_ref[j] + x1 * p_ref[4 + j] + x2 * p_ref[8 + j] + p_ref[12 + j]
        acc = acc + jnp.maximum(h, 0.0) * p_ref[16 + j]
    o_ref[...] = acc


def pack_params(w1, b1, w2, b2):
    """w1 (3,4), b1 (4,), w2 (4,1) or (4,), b2 (1,) -> flat (21,) f32 vector."""
    return jnp.concatenate([
        w1.astype(jnp.float32).reshape(-1),   # row-major: w1[i, j] -> p[4*i + j]
        b1.astype(jnp.float32).reshape(-1),
        w2.astype(jnp.float32).reshape(-1),
        b2.astype(jnp.float32).reshape(-1),
    ])


def _pick_tile_blocks(nb):
    """Blocks (of 128 rows) per grid step."""
    if nb <= SINGLE_STEP_BLOCKS:
        return nb                              # one step covers the whole small batch
    # >= 2 grid steps so ("parallel",) shards across both v7x TensorCores; keep the
    # tile sublane-aligned (multiple of 8) so the block shape lowers cleanly.
    half = ((pl.cdiv(nb, 2) + 7) // 8) * 8
    return min(MAX_TILE_BLOCKS, half)


def _forward_padded(params, x_t):
    """x_t: (3, nb, 128) f32 feature-major slab -> padded (nb, 128) predictions."""
    _, nb, _ = x_t.shape
    tbo = _pick_tile_blocks(nb)
    grid = (pl.cdiv(nb, tbo),)   # ragged final block is masked by Pallas (no full-tile
                                 # HBM padding); garbage in its padded region is only
                                 # written to the discarded part of the output block.
    return pl.pallas_call(
        _mlp_kernel,
        out_shape=jax.ShapeDtypeStruct((nb, LANES), jnp.float32),
        grid=grid,
        in_specs=[
            pl.BlockSpec(memory_space=pltpu.MemorySpace.SMEM),        # params (21,)
            # NOTE: sweep pipeline_mode=pl.Buffered(3) here only if a trace shows
            # exposed DMA at step boundaries.
            pl.BlockSpec((IN_F, tbo, LANES), lambda i: (0, i, 0)),    # x tile
        ],
        out_specs=pl.BlockSpec((tbo, LANES), lambda i: (i, 0)),
        compiler_params=pltpu.CompilerParams(
            dimension_semantics=("parallel",)),                       # megacore on v7x
    )(params, x_t)


def weight_prediction_forward_fm(params, x_fm, *, return_padded=False):
    """Feature-major entry point (preferred: no transpose in the wrapper).

    x_fm: (3, B) f32.  Returns (B, 1), or the padded (nb, 128) slab when
    return_padded=True so a downstream consumer can fuse/skip the slice.
    Row b lives at (block b // 128, lane b % 128) of the slab.
    """
    B = x_fm.shape[1]
    nb = pl.cdiv(B, LANES)
    Bp = nb * LANES
    x_t = jnp.pad(x_fm.astype(jnp.float32), ((0, 0), (0, Bp - B))).reshape(IN_F, nb, LANES)
    out = _forward_padded(params, x_t)
    if return_padded:
        return out
    # Padded rows carry relu(b1)@w2 + b2 values; sliced off here, never consumed.
    return out.reshape(Bp, OUT_F)[:B]


def weight_prediction_forward(x, w1, b1, w2, b2):
    """PyTorch-shaped entry point: x (B, 3) f32 -> (B, 1).

    The transpose to feature-major is a separate XLA op whose HBM traffic exceeds
    the kernel's own for this memory-bound problem; producers that can emit (3, B)
    should call weight_prediction_forward_fm directly.
    NOTE: distinct padded batch sizes retrace under jit (shape-dependent tiling).
    """
    params = pack_params(w1, b1, w2, b2)
    return weight_prediction_forward_fm(params, x.astype(jnp.float32).T)


def init_params(key):
    """Deterministic init matching the PyTorch module's __init__ semantics.

    layer1.weight: kaiming_uniform_(a=sqrt(5)) on a (4,3) tensor -> bound sqrt(1/3)
    layer2.weight: xavier_uniform_(gain=1)     on a (1,4) tensor -> bound sqrt(6/5)
    biases filled with 0.1.  Weights returned transposed to (in, out) layout.
    """
    k1, k2 = jax.random.split(key)
    bound1 = math.sqrt(1.0 / 3.0)
    w1_torch = jax.random.uniform(k1, (HID_F, IN_F), jnp.float32,
                                  minval=-bound1, maxval=bound1)
    bound2 = math.sqrt(6.0 / (HID_F + OUT_F))
    w2_torch = jax.random.uniform(k2, (OUT_F, HID_F), jnp.float32,
                                  minval=-bound2, maxval=bound2)
    b1 = jnp.full((HID_F,), 0.1, jnp.float32)
    b2 = jnp.full((OUT_F,), 0.1, jnp.float32)
    return w1_torch.T, b1, w2_torch.T, b2   # (3,4), (4,), (4,1), (1,)


def _ref_forward(x, w1, b1, w2, b2):
    return jnp.maximum(x @ w1 + b1, 0.0) @ w2 + b2


if __name__ == "__main__":
    key = jax.random.PRNGKey(0)
    kx, kx2, kx3, kp = jax.random.split(key, 4)

    w1, b1, w2, b2 = init_params(kp)
    fwd = jax.jit(weight_prediction_forward)

    # small batch (single tile, padded lanes sliced off)
    B = 8
    x = jax.random.normal(kx, (B, IN_F), jnp.float32)
    out = jax.block_until_ready(fwd(x, w1, b1, w2, b2))
    ref = _ref_forward(x, w1, b1, w2, b2)
    assert out.shape == (B, OUT_F)
    assert jnp.allclose(out, ref, atol=1e-5, rtol=1e-5)

    # non-multiple-of-128 batch (exercises lane padding)
    B2 = 300
    x2 = jax.random.normal(kx2, (B2, IN_F), jnp.float32)
    out2 = jax.block_until_ready(fwd(x2, w1, b1, w2, b2))
    ref2 = _ref_forward(x2, w1, b1, w2, b2)
    assert out2.shape == (B2, OUT_F)
    assert jnp.allclose(out2, ref2, atol=1e-5, rtol=1e-5)

    # batch large enough for a >=2-step grid with a ragged final block
    # (exercises the megacore split + cdiv-grid masking path)
    B3 = 5000
    x3 = jax.random.normal(kx3, (B3, IN_F), jnp.float32)
    out3 = jax.block_until_ready(fwd(x3, w1, b1, w2, b2))
    ref3 = _ref_forward(x3, w1, b1, w2, b2)
    assert out3.shape == (B3, OUT_F)
    assert jnp.allclose(out3, ref3, atol=1e-5, rtol=1e-5)

    # feature-major fast path (no wrapper transpose), padded-slab return
    params = pack_params(w1, b1, w2, b2)
    slab = jax.block_until_ready(
        jax.jit(lambda p, xfm: weight_prediction_forward_fm(p, xfm, return_padded=True))(
            params, x2.T))
    assert slab.shape == (pl.cdiv(B2, LANES), LANES)
    assert jnp.allclose(slab.reshape(-1)[:B2], ref2.reshape(-1), atol=1e-5, rtol=1e-5)

    print("KERNEL_OK")
</pallas_src>

<mosaic_0001>
module attributes {stable_mosaic.version = 11 : i64} {
  func.func @_mlp_kernel(%arg0: i32, %arg1: memref<21xf32, #tpu.memory_space<smem>>, %arg2: memref<3x1x128xf32, #tpu.memory_space<vmem>>, %arg3: memref<1x128xf32, #tpu.memory_space<vmem>>) attributes {dimension_semantics = [#tpu.dimension_semantics<parallel>], iteration_bounds = array<i64: 1>, scalar_prefetch = 0 : i64, scratch_operands = 0 : i64, tpu.core_type = #tpu.core_type<tc>, window_params = [{transform_indices = @transform_0, window_bounds = array<i64: 21>}, {transform_indices = @transform_1, window_bounds = array<i64: 3, 1, 128>}, {transform_indices = @transform_2, window_bounds = array<i64: 1, 128>}]} {
    %c0 = arith.constant 0 : index
    %c0_0 = arith.constant 0 : index
    %c0_1 = arith.constant 0 : index
    %0 = vector.load %arg2[%c0, %c0_0, %c0_1] : memref<3x1x128xf32, #tpu.memory_space<vmem>>, vector<1x1x128xf32>
    %1 = vector.shape_cast %0 : vector<1x1x128xf32> to vector<1x128xf32>
    %c1 = arith.constant 1 : index
    %c0_2 = arith.constant 0 : index
    %c0_3 = arith.constant 0 : index
    %2 = vector.load %arg2[%c1, %c0_2, %c0_3] : memref<3x1x128xf32, #tpu.memory_space<vmem>>, vector<1x1x128xf32>
    %3 = vector.shape_cast %2 : vector<1x1x128xf32> to vector<1x128xf32>
    %c2 = arith.constant 2 : index
    %c0_4 = arith.constant 0 : index
    %c0_5 = arith.constant 0 : index
    %4 = vector.load %arg2[%c2, %c0_4, %c0_5] : memref<3x1x128xf32, #tpu.memory_space<vmem>>, vector<1x1x128xf32>
    %5 = vector.shape_cast %4 : vector<1x1x128xf32> to vector<1x128xf32>
    %c0_6 = arith.constant 0 : index
    %6 = memref.load %arg1[%c0_6] : memref<21xf32, #tpu.memory_space<smem>>
    %7 = vector.broadcast %6 : f32 to vector<1x128xf32>
    %8 = arith.mulf %1, %7 : vector<1x128xf32>
    %c4 = arith.constant 4 : index
    %9 = memref.load %arg1[%c4] : memref<21xf32, #tpu.memory_space<smem>>
    %10 = vector.broadcast %9 : f32 to vector<1x128xf32>
    %11 = arith.mulf %3, %10 : vector<1x128xf32>
    %12 = arith.addf %8, %11 : vector<1x128xf32>
    %c8 = arith.constant 8 : index
    %13 = memref.load %arg1[%c8] : memref<21xf32, #tpu.memory_space<smem>>
    %14 = vector.broadcast %13 : f32 to vector<1x128xf32>
    %15 = arith.mulf %5, %14 : vector<1x128xf32>
    %16 = arith.addf %12, %15 : vector<1x128xf32>
    %c12 = arith.constant 12 : index
    %17 = memref.load %arg1[%c12] : memref<21xf32, #tpu.memory_space<smem>>
    %18 = vector.broadcast %17 : f32 to vector<1x128xf32>
    %19 = arith.addf %16, %18 : vector<1x128xf32>
    %cst = arith.constant 0.000000e+00 : f32
    %20 = vector.broadcast %cst : f32 to vector<1x128xf32>
    %21 = arith.maximumf %19, %20 : vector<1x128xf32>
    %c16 = arith.constant 16 : index
    %22 = memref.load %arg1[%c16] : memref<21xf32, #tpu.memory_space<smem>>
    %23 = vector.broadcast %22 : f32 to vector<1x128xf32>
    %24 = arith.mulf %21, %23 : vector<1x128xf32>
    %c20 = arith.constant 20 : index
    %25 = memref.load %arg1[%c20] : memref<21xf32, #tpu.memory_space<smem>>
    %26 = vector.broadcast %25 : f32 to vector<1x128xf32>
    %27 = arith.addf %24, %26 : vector<1x128xf32>
    %c1_7 = arith.constant 1 : index
    %28 = memref.load %arg1[%c1_7] : memref<21xf32, #tpu.memory_space<smem>>
    %29 = vector.broadcast %28 : f32 to vector<1x128xf32>
    %30 = arith.mulf %1, %29 : vector<1x128xf32>
    %c5 = arith.constant 5 : index
    %31 = memref.load %arg1[%c5] : memref<21xf32, #tpu.memory_space<smem>>
    %32 = vector.broadcast %31 : f32 to vector<1x128xf32>
    %33 = arith.mulf %3, %32 : vector<1x128xf32>
    %34 = arith.addf %30, %33 : vector<1x128xf32>
    %c9 = arith.constant 9 : index
    %35 = memref.load %arg1[%c9] : memref<21xf32, #tpu.memory_space<smem>>
    %36 = vector.broadcast %35 : f32 to vector<1x128xf32>
    %37 = arith.mulf %5, %36 : vector<1x128xf32>
    %38 = arith.addf %34, %37 : vector<1x128xf32>
    %c13 = arith.constant 13 : index
    %39 = memref.load %arg1[%c13] : memref<21xf32, #tpu.memory_space<smem>>
    %40 = vector.broadcast %39 : f32 to vector<1x128xf32>
    %41 = arith.addf %38, %40 : vector<1x128xf32>
    %cst_8 = arith.constant 0.000000e+00 : f32
    %42 = vector.broadcast %cst_8 : f32 to vector<1x128xf32>
    %43 = arith.maximumf %41, %42 : vector<1x128xf32>
    %c17 = arith.constant 17 : index
    %44 = memref.load %arg1[%c17] : memref<21xf32, #tpu.memory_space<smem>>
    %45 = vector.broadcast %44 : f32 to vector<1x128xf32>
    %46 = arith.mulf %43, %45 : vector<1x128xf32>
    %47 = arith.addf %27, %46 : vector<1x128xf32>
    %c2_9 = arith.constant 2 : index
    %48 = memref.load %arg1[%c2_9] : memref<21xf32, #tpu.memory_space<smem>>
    %49 = vector.broadcast %48 : f32 to vector<1x128xf32>
    %50 = arith.mulf %1, %49 : vector<1x128xf32>
    %c6 = arith.constant 6 : index
    %51 = memref.load %arg1[%c6] : memref<21xf32, #tpu.memory_space<smem>>
    %52 = vector.broadcast %51 : f32 to vector<1x128xf32>
    %53 = arith.mulf %3, %52 : vector<1x128xf32>
    %54 = arith.addf %50, %53 : vector<1x128xf32>
    %c10 = arith.constant 10 : index
    %55 = memref.load %arg1[%c10] : memref<21xf32, #tpu.memory_space<smem>>
    %56 = vector.broadcast %55 : f32 to vector<1x128xf32>
    %57 = arith.mulf %5, %56 : vector<1x128xf32>
    %58 = arith.addf %54, %57 : vector<1x128xf32>
    %c14 = arith.constant 14 : index
    %59 = memref.load %arg1[%c14] : memref<21xf32, #tpu.memory_space<smem>>
    %60 = vector.broadcast %59 : f32 to vector<1x128xf32>
    %61 = arith.addf %58, %60 : vector<1x128xf32>
    %cst_10 = arith.constant 0.000000e+00 : f32
    %62 = vector.broadcast %cst_10 : f32 to vector<1x128xf32>
    %63 = arith.maximumf %61, %62 : vector<1x128xf32>
    %c18 = arith.constant 18 : index
    %64 = memref.load %arg1[%c18] : memref<21xf32, #tpu.memory_space<smem>>
    %65 = vector.broadcast %64 : f32 to vector<1x128xf32>
    %66 = arith.mulf %63, %65 : vector<1x128xf32>
    %67 = arith.addf %47, %66 : vector<1x128xf32>
    %c3 = arith.constant 3 : index
    %68 = memref.load %arg1[%c3] : memref<21xf32, #tpu.memory_space<smem>>
    %69 = vector.broadcast %68 : f32 to vector<1x128xf32>
    %70 = arith.mulf %1, %69 : vector<1x128xf32>
    %c7 = arith.constant 7 : index
    %71 = memref.load %arg1[%c7] : memref<21xf32, #tpu.memory_space<smem>>
    %72 = vector.broadcast %71 : f32 to vector<1x128xf32>
    %73 = arith.mulf %3, %72 : vector<1x128xf32>
    %74 = arith.addf %70, %73 : vector<1x128xf32>
    %c11 = arith.constant 11 : index
    %75 = memref.load %arg1[%c11] : memref<21xf32, #tpu.memory_space<smem>>
    %76 = vector.broadcast %75 : f32 to vector<1x128xf32>
    %77 = arith.mulf %5, %76 : vector<1x128xf32>
    %78 = arith.addf %74, %77 : vector<1x128xf32>
    %c15 = arith.constant 15 : index
    %79 = memref.load %arg1[%c15] : memref<21xf32, #tpu.memory_space<smem>>
    %80 = vector.broadcast %79 : f32 to vector<1x128xf32>
    %81 = arith.addf %78, %80 : vector<1x128xf32>
    %cst_11 = arith.constant 0.000000e+00 : f32
    %82 = vector.broadcast %cst_11 : f32 to vector<1x128xf32>
    %83 = arith.maximumf %81, %82 : vector<1x128xf32>
    %c19 = arith.constant 19 : index
    %84 = memref.load %arg1[%c19] : memref<21xf32, #tpu.memory_space<smem>>
    %85 = vector.broadcast %84 : f32 to vector<1x128xf32>
    %86 = arith.mulf %83, %85 : vector<1x128xf32>
    %87 = arith.addf %67, %86 : vector<1x128xf32>
    %c0_12 = arith.constant 0 : index
    %c0_13 = arith.constant 0 : index
    %88 = vector.load %arg3[%c0_12, %c0_13] : memref<1x128xf32, #tpu.memory_space<vmem>>, vector<1x128xf32>
    tpu.vector_store %arg3[%c0_12, %c0_13], %87 {strides = array<i32>} : memref<1x128xf32, #tpu.memory_space<vmem>>, vector<1x128xf32>,
    return
  }
  func.func @transform_0(%arg0: i32) -> i32 {
    %c0_i32 = arith.constant 0 : i32
    %c0_i32_0 = arith.constant 0 : i32
    return %c0_i32 : i32
  }
  func.func @transform_1(%arg0: i32) -> (i32, i32, i32) {
    %c0_i32 = arith.constant 0 : i32
    %c0_i32_0 = arith.constant 0 : i32
    %c0_i32_1 = arith.constant 0 : i32
    return %c0_i32, %arg0, %c0_i32_0 : i32, i32, i32
  }
  func.func @transform_2(%arg0: i32) -> (i32, i32) {
    %c0_i32 = arith.constant 0 : i32
    %c0_i32_0 = arith.constant 0 : i32
    return %arg0, %c0_i32 : i32, i32
  }
}

</mosaic_0001>

<bundles_post_ra>
// kernel: weight_prediction_forward.1
= control target key start
LH: loop header
LB: loop body
LE: loop exit
PB: predicated region body
PF: predicated region fallthrough
CT: control target
= control target key end

     0   :  { %7 = vsyncpa [#allocation3], 0  ;;  %s199_s0 = inlined_call_operand.vmem [shape: f32[21], index: 0, kind: input, shape index: {}]   ;;  %s200_s1 = inlined_call_operand.vmem [shape: f32[3,1,128], index: 1, kind: input, shape index: {}]   ;;  %s201_s2 = inlined_call_operand.vmem [shape: f32[1,128], index: 2, kind: output, shape index: {}]  }
   0x1   :  { %s14_s11 = sshll.u32 %s199_s0, 4  ;;  %s15_s11 = int_to_ptr.vmem [resolvable:$true] %s14_s11 }
   0x2   :  { %s136_s12 = scalar_lea.vmem %s15_s11, 16  ;;  %p141_p1 = scmp.lt.s32.totalorder %s15_s11, %s15_s11 }
   0x3   :  { %p137_p0 = scmp.ne.s32.totalorder %s15_s11, %s136_s12  ;;  %p142_p2 = scmp.lt.s32.totalorder %s136_s12, %s136_s12 }
   0x5   :  { %p143_p3 = por %p142_p2, %p141_p1 }
   0x7   :  { %p144_p4 = pnand %p143_p3, %p137_p0 }
   0x9   :  { %147 = shalt.err (!%p144_p4)
}
   0xa   :  { %s150_s13 = smov [#allocation2]  }
   0xb   :  { %17 = dma.vmem_to_smem %s15_s11, 16, %s150_s13, [#allocation3]  }
   0xc   :  { %148 = dma.done.wait [#allocation3], 16  }
   0xd   :  { %149 = vsyncadd [#allocation3], 4294967280 }
   0xe   :  { %23 = sfence }
   0xf   :  { %s29_s14 = sld [smem:[#allocation2]]  ;;  %v24_v0 = vld [vmem:[%s200_s1] sm:$0x1]  ;;  %v113_v1 = vld [vmem:[%s200_s1 + $0x1] sm:$0x1] }
  0x10   :  { %s115_s15 = sld [smem:[#allocation2 + $0x4]]  ;;  %v114_v2 = vld [vmem:[%s200_s1 + $0x2] sm:$0x1] }
  0x11   :  { %s116_s16 = sld [smem:[#allocation2 + $0x8]] }
  0x12   :  { %s117_s17 = sld [smem:[#allocation2 + $0xc]] }
  0x13   :  { %s172_s0 = sld [smem:[#allocation2 + $0x10]] }
  0x14   :  { %s177_s22 = sld [smem:[#allocation2 + $0x14]] }
  0x15   :  { %v30_v3 = vstv %s29_s14  ;;  %s120_s25 = sld [smem:[#allocation2 + $0x1]] }
  0x16   :  { %v31_v4 = vmul.f32 %v30_v3, %v24_v0  ;;  %v33_v5 = vstv %s115_s15  ;;  %s121_s26 = sld [smem:[#allocation2 + $0x5]] }
  0x17   :  { %v34_v6 = vmul.f32 %v113_v1, %v33_v5  ;;  %v37_v7 = vstv %s116_s16  ;;  %s122_s27 = sld [smem:[#allocation2 + $0x9]] }
  0x18   :  { %v38_v8 = vmul.f32 %v114_v2, %v37_v7  ;;  %s182_s28 = sld [smem:[#allocation2 + $0xd]]  ;;  %v41_v10 = vstv %s117_s17 }
  0x19   :  { %v35_v9 = vadd.f32 %v34_v6, %v31_v4  ;;  %s184_s29 = sld [smem:[#allocation2 + $0x11]]  ;;  %v45_v21 = vstv %s172_s0 }
  0x1a   :  { %s125_s30 = sld [smem:[#allocation2 + $0x2]]  ;;  %v48_v32 = vstv %s177_s22 }
  0x1b   :  { %v39_v11 = vadd.f32 %v38_v8, %v35_v9  ;;  %v51_v12 = vstv %s120_s25  ;;  %s126_s1 = sld [smem:[#allocation2 + $0x6]] }
  0x1c   :  { %v52_v13 = vmul.f32 %v51_v12, %v24_v0  ;;  %v54_v14 = vstv %s121_s26  ;;  %s127_s3 = sld [smem:[#allocation2 + $0xa]] }
  0x1d   :  { %v42_v15 = vadd.f32 %v41_v10, %v39_v11  ;;  %v55_v16 = vmul.f32 %v113_v1, %v54_v14  ;;  %v58_v17 = vstv %s122_s27  ;;  %s186_s4 = sld [smem:[#allocation2 + $0xe]] }
  0x1e   :  { %v59_v18 = vmul.f32 %v114_v2, %v58_v17  ;;  %s188_s5 = sld [smem:[#allocation2 + $0x12]]  ;;  %v62_v22 = vstv %s182_s28 }
  0x1f   :  { %v43_v19 = vmax.f32 %v42_v15, 0.0  ;;  %v56_v20 = vadd.f32 %v55_v16, %v52_v13  ;;  %s130_s6 = sld [smem:[#allocation2 + $0x3]]  ;;  %v66_v33 = vstv %s184_s29 }
  0x20   :  { %v70_v23 = vstv %s125_s30  ;;  %s131_s7 = sld [smem:[#allocation2 + $0x7]] }
  0x21   :  { %v60_v24 = vadd.f32 %v59_v18, %v56_v20  ;;  %v71_v25 = vmul.f32 %v70_v23, %v24_v0  ;;  %v73_v26 = vstv %s126_s1  ;;  %s132_s8 = sld [smem:[#allocation2 + $0xb]]  ;;  %v46_v29 = vmul.f32 %v45_v21, %v43_v19 }
  0x22   :  { %v74_v27 = vmul.f32 %v113_v1, %v73_v26  ;;  %v77_v28 = vstv %s127_s3  ;;  %s133_s9 = sld [smem:[#allocation2 + $0xf]] }
  0x23   :  { %v63_v30 = vadd.f32 %v62_v22, %v60_v24  ;;  %v78_v31 = vmul.f32 %v114_v2, %v77_v28  ;;  %v81_v36 = vstv %s186_s4  ;;  %s134_s10 = sld [smem:[#allocation2 + $0x13]]  ;;  %v49_v41 = vadd.f32 %v48_v32, %v46_v29 }
  0x24   :  { %v75_v34 = vadd.f32 %v74_v27, %v71_v25  ;;  %v85_v47 = vstv %s188_s5 }
  0x25   :  { %v64_v35 = vmax.f32 %v63_v30, 0.0  ;;  %v89_v37 = vstv %s130_s6 }
  0x26   :  { %v79_v38 = vadd.f32 %v78_v31, %v75_v34  ;;  %v90_v39 = vmul.f32 %v89_v37, %v24_v0  ;;  %v92_v40 = vstv %s131_s7 }
  0x27   :  { %v67_v42 = vmul.f32 %v66_v33, %v64_v35  ;;  %v93_v43 = vmul.f32 %v113_v1, %v92_v40  ;;  %v96_v44 = vstv %s132_s8 }
  0x28   :  { %v82_v45 = vadd.f32 %v81_v36, %v79_v38  ;;  %v97_v46 = vmul.f32 %v114_v2, %v96_v44  ;;  %v100_v50 = vstv %s133_s9 }
  0x29   :  { %v94_v48 = vadd.f32 %v93_v43, %v90_v39  ;;  %v68_v51 = vadd.f32 %v67_v42, %v49_v41  ;;  %v104_v55 = vstv %s134_s10 }
  0x2a   :  { %v83_v49 = vmax.f32 %v82_v45, 0.0 }
  0x2b   :  { %v98_v52 = vadd.f32 %v97_v46, %v94_v48 }
  0x2c   :  { %v86_v53 = vmul.f32 %v85_v47, %v83_v49 }
  0x2d   :  { %v101_v54 = vadd.f32 %v100_v50, %v98_v52 }
  0x2e   :  { %v87_v56 = vadd.f32 %v86_v53, %v68_v51 }
  0x2f   :  { %v102_v57 = vmax.f32 %v101_v54, 0.0 }
  0x31   :  { %v105_v58 = vmul.f32 %v104_v55, %v102_v57 }
  0x33   :  { %v106_v59 = vadd.f32 %v105_v58, %v87_v56 }
  0x35   :  { %107 = vst [vmem:[%s201_s2] sm:$0x1] %v106_v59 }
  0x36   :  { %112 = vsyncpa [#allocation3], 1 }

</bundles_post_ra>
